<compile_context>
chip_gen: v7x
topology: tpu7x:2x2x1
jax: 0.10.0
libtpu: 0.0.40
codegen_flags: <defaults>
</compile_context>

<pallas_src>
import functools
import math

import jax
import jax.numpy as jnp
from jax import lax
from jax.experimental import pallas as pl
from jax.experimental.pallas import tpu as pltpu


def _fit_tile(dim, preferred, align):
    """Largest `align`-multiple divisor of `dim` that is <= `preferred`.

    Small dims (dim <= preferred) use the full dim (full-extent blocks are
    always legal). If no aligned divisor exists we fall back to the full dim.
    """
    if dim <= preferred:
        return dim
    t = (preferred // align) * align
    while t >= align:
        if dim % t == 0:
            return t
        t -= align
    # TODO(synk): for large dims with no aligned divisor, switch to a
    # pl.cdiv grid with edge masking instead of a full-dim block.
    return dim


# ----------------------------------------------------------------------------
# Tiled linear kernels:  y = x @ W + b
#   x: [M, K]   W: [K, N]   b: [1, N]   y: [M, N]
#   grid = (M//tm, N//tn, K//tk);  K is the innermost (reduction) axis.
# ----------------------------------------------------------------------------
def _linear_kernel_f32(x_ref, w_ref, b_ref, o_ref):
    # f32 output: the output block is resident across the k axis, accumulate
    # into it directly (no scratch, no extra full-tile copy/store).
    k_i = pl.program_id(2)

    @pl.when(k_i == 0)
    def _():
        o_ref[...] = jnp.zeros_like(o_ref)

    o_ref[...] += jnp.dot(
        x_ref[...], w_ref[...], preferred_element_type=jnp.float32
    )

    @pl.when(k_i == pl.num_programs(2) - 1)
    def _():
        o_ref[...] += b_ref[...].astype(jnp.float32)


def _linear_kernel_acc(x_ref, w_ref, b_ref, o_ref, acc_ref):
    # Non-f32 output: accumulate in an f32 VMEM scratch, cast on finalize.
    k_i = pl.program_id(2)

    @pl.when(k_i == 0)
    def _():
        acc_ref[...] = jnp.zeros_like(acc_ref)

    acc_ref[...] += jnp.dot(
        x_ref[...], w_ref[...], preferred_element_type=jnp.float32
    )

    @pl.when(k_i == pl.num_programs(2) - 1)
    def _():
        o_ref[...] = (acc_ref[...] + b_ref[...].astype(jnp.float32)).astype(
            o_ref.dtype
        )


def pallas_linear(x2d, w, b, *, tm=512, tn=512, tk=1024):
    M, K = x2d.shape
    K2, N = w.shape
    assert K == K2
    tm = _fit_tile(M, tm, 8)     # sublane dim of x / output
    tn = _fit_tile(N, tn, 128)   # lane dim of W / output
    tk = _fit_tile(K, tk, 128)   # lane dim of x, sublane dim of W
    grid = (M // tm, N // tn, K // tk)

    f32_out = x2d.dtype == jnp.float32
    kernel = _linear_kernel_f32 if f32_out else _linear_kernel_acc
    scratch = [] if f32_out else [pltpu.VMEM((tm, tn), jnp.float32)]

    return pl.pallas_call(
        kernel,
        out_shape=jax.ShapeDtypeStruct((M, N), x2d.dtype),
        grid=grid,
        in_specs=[
            pl.BlockSpec((tm, tk), lambda i, j, k: (i, k)),
            pl.BlockSpec((tk, tn), lambda i, j, k: (k, j)),
            pl.BlockSpec((1, tn), lambda i, j, k: (0, j)),
        ],
        out_specs=pl.BlockSpec((tm, tn), lambda i, j, k: (i, j)),
        scratch_shapes=scratch,
        compiler_params=pltpu.CompilerParams(
            dimension_semantics=("parallel", "parallel", "arbitrary"),
            vmem_limit_bytes=48 * 1024 * 1024,   # headroom on v7x (64 MiB phys)
        ),
    )(x2d, w, b.reshape(1, N))


# ----------------------------------------------------------------------------
# Flash attention kernel (online softmax), grid = (B, Sq//tq, Skv//tkv).
#   q: [B, Sq, d_model] (already scaled by 1/sqrt(d_k))
#   k, v: [B, Skv, d_model]    mask: [B, 1, Sq, Skv] int8/bool (0 == masked)
#   out: [B, Sq, d_model]  (heads processed in-kernel; lane-dense output)
# ----------------------------------------------------------------------------
def _flash_attn_kernel(*refs, num_heads, d_k, has_mask, approx_recip):
    if has_mask:
        q_ref, k_ref, v_ref, mask_ref, o_ref, m_sc, l_sc, acc_sc = refs
    else:
        q_ref, k_ref, v_ref, o_ref, m_sc, l_sc, acc_sc = refs
        mask_ref = None

    kv_i = pl.program_id(2)

    @pl.when(kv_i == 0)
    def _():
        m_sc[...] = jnp.full_like(m_sc, -jnp.inf)
        l_sc[...] = jnp.zeros_like(l_sc)
        acc_sc[...] = jnp.zeros_like(acc_sc)

    q_all = q_ref[0]    # (tq,  d_model)  — 1/sqrt(d_k) folded into Wq/bq
    k_all = k_ref[0]    # (tkv, d_model)
    v_all = v_ref[0]    # (tkv, d_model)

    if has_mask:
        # Additive bias computed once per (q, kv) tile, shared by all heads.
        bias = jnp.where(
            mask_ref[0, 0] == 0, jnp.float32(-1e9), jnp.float32(0.0)
        )

    # TODO(synk): when d_k is a multiple of 128, promote heads to a grid axis
    # with a lane-slicing index_map instead of this unrolled Python loop
    # (shrinks scratch to one head and avoids sub-128 lane slices).
    for hh in range(num_heads):
        sl = slice(hh * d_k, (hh + 1) * d_k)
        q = q_all[:, sl]
        k = k_all[:, sl]
        v = v_all[:, sl]

        # NT contraction over the last dim — MXU consumes it directly,
        # no (tkv, d_k) transpose per head per kv step.
        s = lax.dot_general(
            q, k,
            dimension_numbers=(((1,), (1,)), ((), ())),
            preferred_element_type=jnp.float32,
        )                                                   # (tq, tkv) f32
        if has_mask:
            s = s + bias

        m_prev = m_sc[hh]                                   # (tq, 1)
        m_new = jnp.maximum(m_prev, jnp.max(s, axis=-1, keepdims=True))
        alpha = jnp.exp(m_prev - m_new)
        p = jnp.exp(s - m_new)

        l_sc[hh] = alpha * l_sc[hh] + jnp.sum(p, axis=-1, keepdims=True)
        acc_sc[hh] = alpha * acc_sc[hh] + jnp.dot(
            p.astype(v.dtype), v, preferred_element_type=jnp.float32
        )
        m_sc[hh] = m_new

    @pl.when(kv_i == pl.num_programs(2) - 1)
    def _():
        outs = []
        for hh in range(num_heads):
            l = l_sc[hh]
            # Guard fully-masked / degenerate rows (l == 0) against inf/NaN.
            l = jnp.where(l <= 0.0, jnp.float32(1.0), l)
            if approx_recip:
                inv_l = pl.reciprocal(l, approx=True)       # EUP slot
            else:
                inv_l = 1.0 / l
            outs.append(acc_sc[hh] * inv_l)
        # Single lane-dense (tq, d_model) store (heads merged along lanes).
        o_ref[0] = jnp.concatenate(outs, axis=-1).astype(o_ref.dtype)


def pallas_flash_attention(q, k, v, mask, num_heads, *, tq=256, tkv=256,
                           approx_recip=True):
    """q (pre-scaled): [B,Sq,D], k/v: [B,Skv,D], mask: [B,1,Sq,Skv] or None."""
    B, Sq, d_model = q.shape
    _, Skv, _ = k.shape
    d_k = d_model // num_heads

    tq = _fit_tile(Sq, tq, 8)        # sublane dim
    tkv = _fit_tile(Skv, tkv, 128)   # lane dim of the mask / score tile
    grid = (B, Sq // tq, Skv // tkv)

    has_mask = mask is not None

    in_specs = [
        pl.BlockSpec((1, tq, d_model), lambda b, qi, ki: (b, qi, 0)),
        pl.BlockSpec((1, tkv, d_model), lambda b, qi, ki: (b, ki, 0)),
        pl.BlockSpec((1, tkv, d_model), lambda b, qi, ki: (b, ki, 0)),
    ]
    args = [q, k, v]
    if has_mask:
        # Mask should already be int8/bool (built once at the call site);
        # only cast defensively if it is not.
        if mask.dtype != jnp.int8 and mask.dtype != jnp.bool_:
            mask = mask.astype(jnp.int8)
        in_specs.append(
            pl.BlockSpec((1, 1, tq, tkv), lambda b, qi, ki: (b, 0, qi, ki))
        )
        args.append(mask)

    kernel = functools.partial(
        _flash_attn_kernel,
        num_heads=num_heads,
        d_k=d_k,
        has_mask=has_mask,
        approx_recip=approx_recip,
    )

    return pl.pallas_call(
        kernel,
        out_shape=jax.ShapeDtypeStruct((B, Sq, d_model), q.dtype),
        grid=grid,
        in_specs=in_specs,
        out_specs=pl.BlockSpec((1, tq, d_model), lambda b, qi, ki: (b, qi, 0)),
        scratch_shapes=[
            pltpu.VMEM((num_heads, tq, 1), jnp.float32),    # running max  m
            pltpu.VMEM((num_heads, tq, 1), jnp.float32),    # running sum  l
            pltpu.VMEM((num_heads, tq, d_k), jnp.float32),  # unnormalized acc
        ],
        compiler_params=pltpu.CompilerParams(
            dimension_semantics=("parallel", "parallel", "arbitrary"),
            vmem_limit_bytes=48 * 1024 * 1024,
        ),
    )(*args)


# ----------------------------------------------------------------------------
# Full MultiHeadAttentionLayer forward
# ----------------------------------------------------------------------------
def multi_head_attention(query, key, value, mask, params, d_model, h):
    """query: [B,Sq,D], key/value: [B,Skv,D], mask: [B,1,Sq,Skv] or None."""
    B, Sq, _ = query.shape
    _, Skv, _ = key.shape
    d_k = d_model // h
    sm_scale = 1.0 / math.sqrt(d_k)

    # Fold 1/sqrt(d_k) into the (constant) q projection — the attention
    # kernel then never rescales q per kv step.
    wq = params["wq"] * sm_scale
    bq = params["bq"] * sm_scale

    # Projections.  No head-split transposes: heads are handled inside the
    # attention kernel from the lane-dense [B, S, d_model] layout.
    # TODO(synk): for pure self-attention the three projections could be
    # fused into one [D, 3D] matmul to read x once; kept separate to preserve
    # the module's cross-attention semantics.
    q = pallas_linear(query.reshape(B * Sq, d_model), wq, bq)
    k = pallas_linear(key.reshape(B * Skv, d_model), params["wk"], params["bk"])
    v = pallas_linear(value.reshape(B * Skv, d_model), params["wv"], params["bv"])

    attn = pallas_flash_attention(
        q.reshape(B, Sq, d_model),
        k.reshape(B, Skv, d_model),
        v.reshape(B, Skv, d_model),
        mask,
        h,
    )  # [B, Sq, d_model] — heads already merged lane-dense, no transpose

    out = pallas_linear(attn.reshape(B * Sq, d_model), params["wo"], params["bo"])
    return out.reshape(B, Sq, d_model)


def init_params(key, d_model):
    ks = jax.random.split(key, 8)
    scale = 1.0 / math.sqrt(d_model)
    return {
        "wq": jax.random.normal(ks[0], (d_model, d_model), jnp.float32) * scale,
        "bq": jax.random.normal(ks[1], (d_model,), jnp.float32) * 0.01,
        "wk": jax.random.normal(ks[2], (d_model, d_model), jnp.float32) * scale,
        "bk": jax.random.normal(ks[3], (d_model,), jnp.float32) * 0.01,
        "wv": jax.random.normal(ks[4], (d_model, d_model), jnp.float32) * scale,
        "bv": jax.random.normal(ks[5], (d_model,), jnp.float32) * 0.01,
        "wo": jax.random.normal(ks[6], (d_model, d_model), jnp.float32) * scale,
        "bo": jax.random.normal(ks[7], (d_model,), jnp.float32) * 0.01,
    }


def ref_forward(q_in, k_in, v_in, mask, params, d_model, h):
    """Pure-JAX reference matching the PyTorch module."""
    B, Sq, _ = q_in.shape
    _, Skv, _ = k_in.shape
    d_k = d_model // h

    def proj(x, w, b, S):
        y = x @ w + b
        return jnp.transpose(y.reshape(B, S, h, d_k), (0, 2, 1, 3))

    qh = proj(q_in, params["wq"], params["bq"], Sq)
    kh = proj(k_in, params["wk"], params["bk"], Skv)
    vh = proj(v_in, params["wv"], params["bv"], Skv)
    s = jnp.einsum("bhqd,bhkd->bhqk", qh, kh) / math.sqrt(d_k)
    if mask is not None:
        s = jnp.where(mask == 0, -1e9, s)
    p = jax.nn.softmax(s, axis=-1)
    o = jnp.einsum("bhqk,bhkd->bhqd", p, vh)
    o = jnp.transpose(o, (0, 2, 1, 3)).reshape(B, Sq, d_model)
    return o @ params["wo"] + params["bo"]


if __name__ == "__main__":
    B, S, d_model, h = 2, 8, 32, 4

    root = jax.random.PRNGKey(0)
    kp, kq, kk, kv = jax.random.split(root, 4)

    params = init_params(kp, d_model)
    query = jax.random.normal(kq, (B, S, d_model), jnp.float32)
    key = jax.random.normal(kk, (B, S, d_model), jnp.float32)
    value = jax.random.normal(kv, (B, S, d_model), jnp.float32)

    # causal mask, broadcast over heads: [B, 1, S, S], 0 == masked.
    # Built as int8 once here (hoisted out of the kernel wrapper).
    causal = jnp.tril(jnp.ones((S, S), jnp.int8))
    mask = jnp.broadcast_to(causal[None, None, :, :], (B, 1, S, S))

    # masked (causal) attention
    out = multi_head_attention(query, key, value, mask, params, d_model, h)
    out = jax.block_until_ready(out)
    ref = ref_forward(query, key, value, mask, params, d_model, h)
    assert jnp.allclose(out, ref, atol=1e-2, rtol=1e-2), "masked attention mismatch"

    # unmasked path (mask=None)
    out2 = multi_head_attention(query, key, value, None, params, d_model, h)
    out2 = jax.block_until_ready(out2)
    ref2 = ref_forward(query, key, value, None, params, d_model, h)
    assert jnp.allclose(out2, ref2, atol=1e-2, rtol=1e-2), "unmasked attention mismatch"

    print("KERNEL_OK")
</pallas_src>

<mosaic_0001>
module attributes {stable_mosaic.version = 11 : i64} {
  func.func @_linear_kernel_f32(%arg0: i32, %arg1: i32, %arg2: i32, %arg3: memref<16x32xf32, #tpu.memory_space<vmem>>, %arg4: memref<32x32xf32, #tpu.memory_space<vmem>>, %arg5: memref<1x32xf32, #tpu.memory_space<vmem>>, %arg6: memref<16x32xf32, #tpu.memory_space<vmem>>) attributes {dimension_semantics = [#tpu.dimension_semantics<parallel>, #tpu.dimension_semantics<parallel>, #tpu.dimension_semantics<arbitrary>], iteration_bounds = array<i64: 1, 1, 1>, scalar_prefetch = 0 : i64, scratch_operands = 0 : i64, tpu.core_type = #tpu.core_type<tc>, window_params = [{transform_indices = @transform_0, window_bounds = array<i64: 16, 32>}, {transform_indices = @transform_1, window_bounds = array<i64: 32, 32>}, {transform_indices = @transform_2, window_bounds = array<i64: 1, 32>}, {transform_indices = @transform_3, window_bounds = array<i64: 16, 32>}]} {
    %c0_i32 = arith.constant 0 : i32
    %0 = arith.cmpi eq, %arg2, %c0_i32 : i32
    %1 = arith.extui %0 : i1 to i32
    %c0_i32_0 = arith.constant 0 : i32
    %2 = arith.cmpi ne, %1, %c0_i32_0 : i32
    scf.if %2 {
      %cst_10 = arith.constant 0.000000e+00 : f32
      %12 = vector.broadcast %cst_10 : f32 to vector<16x32xf32>
      %c0_11 = arith.constant 0 : index
      %c0_12 = arith.constant 0 : index
      %13 = vector.load %arg6[%c0_11, %c0_12] : memref<16x32xf32, #tpu.memory_space<vmem>>, vector<16x32xf32>
      tpu.vector_store %arg6[%c0_11, %c0_12], %12 {strides = array<i32>} : memref<16x32xf32, #tpu.memory_space<vmem>>, vector<16x32xf32>,
    } else {
    }
    %c0 = arith.constant 0 : index
    %c0_1 = arith.constant 0 : index
    %3 = vector.load %arg6[%c0, %c0_1] : memref<16x32xf32, #tpu.memory_space<vmem>>, vector<16x32xf32>
    %c0_2 = arith.constant 0 : index
    %c0_3 = arith.constant 0 : index
    %4 = vector.load %arg3[%c0_2, %c0_3] : memref<16x32xf32, #tpu.memory_space<vmem>>, vector<16x32xf32>
    %c0_4 = arith.constant 0 : index
    %c0_5 = arith.constant 0 : index
    %5 = vector.load %arg4[%c0_4, %c0_5] : memref<32x32xf32, #tpu.memory_space<vmem>>, vector<32x32xf32>
    %cst = arith.constant dense<0.000000e+00> : vector<16x32xf32>
    %6 = tpu.matmul %4, %5, %cst {dimension_numbers = #tpu.dot_dimension_numbers<[1], [0], [0], [1], [0, 0, 1, 1], [], []>} : vector<16x32xf32>, vector<32x32xf32>, vector<16x32xf32> -> vector<16x32xf32>
    %7 = arith.addf %3, %6 : vector<16x32xf32>
    %c0_6 = arith.constant 0 : index
    %c0_7 = arith.constant 0 : index
    %8 = vector.load %arg6[%c0_6, %c0_7] : memref<16x32xf32, #tpu.memory_space<vmem>>, vector<16x32xf32>
    tpu.vector_store %arg6[%c0_6, %c0_7], %7 {strides = array<i32>} : memref<16x32xf32, #tpu.memory_space<vmem>>, vector<16x32xf32>,
    %c0_i32_8 = arith.constant 0 : i32
    %9 = arith.cmpi eq, %arg2, %c0_i32_8 : i32
    %10 = arith.extui %9 : i1 to i32
    %c0_i32_9 = arith.constant 0 : i32
    %11 = arith.cmpi ne, %10, %c0_i32_9 : i32
    scf.if %11 {
      %c0_10 = arith.constant 0 : index
      %c0_11 = arith.constant 0 : index
      %12 = vector.load %arg6[%c0_10, %c0_11] : memref<16x32xf32, #tpu.memory_space<vmem>>, vector<16x32xf32>
      %c0_12 = arith.constant 0 : index
      %c0_13 = arith.constant 0 : index
      %13 = vector.load %arg5[%c0_12, %c0_13] : memref<1x32xf32, #tpu.memory_space<vmem>>, vector<1x32xf32>
      %14 = vector.broadcast %13 : vector<1x32xf32> to vector<16x32xf32>
      %15 = arith.addf %12, %14 : vector<16x32xf32>
      %c0_14 = arith.constant 0 : index
      %c0_15 = arith.constant 0 : index
      %16 = vector.load %arg6[%c0_14, %c0_15] : memref<16x32xf32, #tpu.memory_space<vmem>>, vector<16x32xf32>
      tpu.vector_store %arg6[%c0_14, %c0_15], %15 {strides = array<i32>} : memref<16x32xf32, #tpu.memory_space<vmem>>, vector<16x32xf32>,
    } else {
    }
    return
  }
  func.func @transform_0(%arg0: i32, %arg1: i32, %arg2: i32) -> (i32, i32) {
    %c0_i32 = arith.constant 0 : i32
    return %arg0, %arg2 : i32, i32
  }
  func.func @transform_1(%arg0: i32, %arg1: i32, %arg2: i32) -> (i32, i32) {
    %c0_i32 = arith.constant 0 : i32
    return %arg2, %arg1 : i32, i32
  }
  func.func @transform_2(%arg0: i32, %arg1: i32, %arg2: i32) -> (i32, i32) {
    %c0_i32 = arith.constant 0 : i32
    %c0_i32_0 = arith.constant 0 : i32
    return %c0_i32, %arg1 : i32, i32
  }
  func.func @transform_3(%arg0: i32, %arg1: i32, %arg2: i32) -> (i32, i32) {
    %c0_i32 = arith.constant 0 : i32
    return %arg0, %arg1 : i32, i32
  }
}

</mosaic_0001>

<bundles_post_ra>
// kernel: tpu_custom_call.1
= control target key start
LH: loop header
LB: loop body
LE: loop exit
PB: predicated region body
PF: predicated region fallthrough
CT: control target
= control target key end

     0   :  { %8 = vsyncpa [#allocation3], 0  ;;  %s366_s0 = inlined_call_operand.hbm [shape: f32[16,32], index: 0, kind: input, shape index: {}]   ;;  %s367_s1 = inlined_call_operand.hbm [shape: f32[32,32], index: 1, kind: input, shape index: {}]   ;;  %s368_s2 = inlined_call_operand.vmem [shape: f32[1,32], index: 2, kind: input, shape index: {}]   ;;  %s369_s3 = inlined_call_operand.hbm [shape: f32[16,32], index: 3, kind: output, shape index: {}]  }
   0x1   :  { %9 = vsyncpa [#allocation6], 0 }
   0x2   :  { %10 = vsyncpa [#allocation4], 0  ;;  %s284_s12 = smov [#allocation2]   ;;  %s212_s16 = scalar_lea.hbm %s366_s0, 256 }
   0x3   :  { %s16_s13 = sshll.u32 %s284_s12, 4  ;;  %p213_p0 = scmp.ne.s32.totalorder %s366_s0, %s212_s16  ;;  %s17_s13 = int_to_ptr.vmem [resolvable:$true] %s16_s13 }
   0x4   :  { %p216_p1 = scmp.lt.u32.totalorder %s212_s16, %s366_s0 }
   0x6   :  { %p218_p2 = pnand %p216_p1, %p213_p0 }
   0x8   :  { %221 = shalt.err (!%p218_p2)
}
   0x9   :  { %s222_s21 = scalar_lea.vmem %s17_s13, 256  ;;  %p227_p4 = scmp.lt.s32.totalorder %s17_s13, %s17_s13 }
   0xa   :  { %p223_p3 = scmp.ne.s32.totalorder %s17_s13, %s222_s21  ;;  %p228_p5 = scmp.lt.s32.totalorder %s222_s21, %s222_s21 }
   0xc   :  { %p229_p6 = por %p228_p5, %p227_p4 }
   0xe   :  { %p230_p7 = pnand %p229_p6, %p223_p3 }
  0x10   :  { %233 = shalt.err (!%p230_p7)
}
  0x11   :  { %s285_s22 = smov 128   ;;  %s286_s23 = smov 8  }
  0x12   :  { %22 = dma.hbm_to_vmem [thread:$0]  %s366_s0, 256, %s17_s13, [#allocation3], %s285_s22, %s285_s22, %s286_s23  }
  0x13   :  { %s287_s26 = smov [#allocation5]   ;;  %s234_s30 = scalar_lea.hbm %s367_s1, 512 }
  0x14   :  { %s28_s27 = sshll.u32 %s287_s26, 4  ;;  %p235_p8 = scmp.ne.s32.totalorder %s367_s1, %s234_s30  ;;  %s29_s27 = int_to_ptr.vmem [resolvable:$true] %s28_s27 }
  0x15   :  { %p238_p9 = scmp.lt.u32.totalorder %s234_s30, %s367_s1 }
  0x17   :  { %p240_p10 = pnand %p238_p9, %p235_p8 }
  0x19   :  { %243 = shalt.err (!%p240_p10)
}
  0x1a   :  { %s244_s8 = scalar_lea.vmem %s29_s27, 512  ;;  %p249_p12 = scmp.lt.s32.totalorder %s29_s27, %s29_s27 }
  0x1b   :  { %p245_p11 = scmp.ne.s32.totalorder %s29_s27, %s244_s8  ;;  %p250_p13 = scmp.lt.s32.totalorder %s244_s8, %s244_s8 }
  0x1d   :  { %p251_p0 = por %p250_p13, %p249_p12 }
  0x1f   :  { %p252_p1 = pnand %p251_p0, %p245_p11 }
  0x21   :  { %255 = shalt.err (!%p252_p1)
}
  0x22   :  { %34 = dma.hbm_to_vmem [thread:$0]  %s367_s1, 512, %s29_s27, [#allocation6], %s285_s22, %s285_s22, %s286_s23  }
  0x23   :  { %278 = dma.done.wait [#allocation3], 256  }
  0x24   :  { %279 = vsyncadd [#allocation3], 4294967040 }
  0x25   :  { %280 = dma.done.wait [#allocation6], 512  }
  0x26   :  { %281 = vsyncadd [#allocation6], 4294966784  ;;  %vm47_vm0 = vcmask 261120   ;;  %v288_v0 = vmov 0.0   ;;  %v54_v1 = vld [vmem:[#allocation5] sm:$0xff]  ;;  %v55_v2 = vld [vmem:[#allocation5 + $0x8] sm:$0xff] }
  0x27   :  { %49 = vst.msk [vmem:[#allocation7 + $0x8] sm:$0xff] %vm47_vm0, %v288_v0  ;;  %48 = vst.msk [vmem:[#allocation7] sm:$0xff] %vm47_vm0, %v288_v0  ;;  %v56_v3 = vld [vmem:[#allocation5 + $0x10] sm:$0xff]  ;;  %v198_v4 = vpack.c.bf16 %v55_v2, %v54_v1  ;;  %v57_v5 = vld [vmem:[#allocation5 + $0x18] sm:$0xff]  ;;  %s289_s11 = smov [#allocation7]  }
  0x28   :  { %v52_v6 = vld [vmem:[#allocation2] sm:$0xff]  ;;  %v202_v7 = vpack.c.bf16 %v57_v5, %v56_v3  ;;  %v53_v8 = vld [vmem:[#allocation2 + $0x8] sm:$0xff]  ;;  %s165_s12 = sshll.u32 %s289_s11, 4  ;;  %s166_s12 = int_to_ptr.vmem [resolvable:$true] %s165_s12 }
  0x29   :  { %195 = vmatprep.mubr.msk.f32.mxu0 %vm47_vm0, %v52_v6  ;;  %199 = vmatprep.subr.bf16.mxu0 %v198_v4  ;;  %v180_v15 = vld [vmem:[%s368_s2] ss:$0 sm:$0xff]  ;;  %s256_s13 = scalar_lea.vmem %s166_s12, 256  ;;  %p261_p3 = scmp.lt.s32.totalorder %s166_s12, %s166_s12 }
  0x2a   :  { %201 = vmatpush3.bf16.msra.mxu0 %v198_v4  ;;  %p257_p2 = scmp.ne.s32.totalorder %s166_s12, %s256_s13  ;;  %p262_p4 = scmp.lt.s32.totalorder %s256_s13, %s256_s13 }
  0x2b   :  { %203 = vmatprep.subr.bf16.mxu0 %v202_v7 }
  0x2c   :  { %p263_p5 = por %p262_p4, %p261_p3 }
  0x2e   :  { %205 = vmatpush3.bf16.msra.mxu0 %v202_v7  ;;  %v51_v9 = vld [vmem:[#allocation7 + $0x8] sm:$0xff]  ;;  %v50_v10 = vld [vmem:[#allocation7] sm:$0xff]  ;;  %p264_p6 = pnand %p263_p5, %p257_p2 }
  0x31   :  { %196 = vmatmul.mubr.msk.f32.vlgmr.msra.gmra.mrb[0].mxu0 %vm47_vm0, %v53_v8 }
 0x104   :  { %v197_v11 = vpop.f32.mrb[0].mxu0 }
 0x105   :  { %v141_v12 = vadd.f32 %v197_v11, %v51_v9  ;;  %v131_v13 = vpop.f32.mrb[1].mxu0 }
 0x106   :  { %v140_v14 = vadd.f32 %v131_v13, %v50_v10 }
 0x107   :  { %143 = vst.msk [vmem:[#allocation7 + $0x8] sm:$0xff] %vm47_vm0, %v141_v12 }
 0x108   :  { %142 = vst.msk [vmem:[#allocation7] sm:$0xff] %vm47_vm0, %v140_v14 }
 0x10e   :  { %v148_v16 = vld [vmem:[#allocation7 + $0x8] sm:$0xff] }
 0x10f   :  { %v147_v17 = vld [vmem:[#allocation7] sm:$0xff]  ;;  %v157_v18 = vadd.f32 %v180_v15, %v148_v16 }
 0x110   :  { %v156_v19 = vadd.f32 %v180_v15, %v147_v17 }
 0x111   :  { %159 = vst.msk [vmem:[#allocation7 + $0x8] sm:$0xff] %vm47_vm0, %v157_v18 }
 0x112   :  { %158 = vst.msk [vmem:[#allocation7] sm:$0xff] %vm47_vm0, %v156_v19 }
 0x113   :  { %267 = shalt.err (!%p264_p6)
}
 0x114   :  { %s268_s15 = scalar_lea.hbm %s369_s3, 256 }
 0x115   :  { %p269_p7 = scmp.ne.s32.totalorder %s369_s3, %s268_s15  ;;  %p272_p8 = scmp.lt.u32.totalorder %s268_s15, %s369_s3 }
 0x117   :  { %p274_p9 = pnand %p272_p8, %p269_p7 }
 0x119   :  { %277 = shalt.err (!%p274_p9)
}
 0x11a   :  { %171 = dma.vmem_to_hbm [thread:$0]  %s166_s12, 256, %s369_s3, [#allocation4], %s285_s22, %s285_s22, %s286_s23  }
 0x11b   :  { %282 = dma.done.wait [#allocation4], 256  }
 0x11c   :  { %283 = vsyncadd [#allocation4], 4294967040 }
 0x11d   :  { %175 = vsyncpa [#allocation3], 1 }
 0x11e   :  { %176 = vsyncpa [#allocation6], 1 }
 0x11f   :  { %177 = vsyncpa [#allocation4], 1 }

</bundles_post_ra>
